<compile_context>
chip_gen: v7x
topology: tpu7x:2x2x1
jax: 0.10.0
libtpu: 0.0.40
codegen_flags: <defaults>
</compile_context>

<pallas_src>
import functools
import math

import numpy as np
import jax
import jax.numpy as jnp
from jax import lax
from jax.experimental import pallas as pl
from jax.experimental.pallas import tpu as pltpu


def _round_up(x, m):
    return ((x + m - 1) // m) * m


def _largest_divisor_leq(n, cap):
    cap = max(1, min(int(cap), int(n)))
    for d in range(cap, 0, -1):
        if n % d == 0:
            return d
    return 1


def _pick_tile(n, align, cap):
    """Largest multiple of `align` that divides n and is <= cap (fallback pads)."""
    if n % align != 0:
        return min(cap, _round_up(n, align))
    best, t, limit = align, align, min(cap, n)
    while t <= limit:
        if n % t == 0:
            best = t
        t += align
    return best


# ---------------------------------------------------------------------------
# Kernel 1: tiled, pipelined  y = x @ w_t + b   (w_t already transposed)
#           Accumulates directly into the K-resident output block.
# ---------------------------------------------------------------------------
def _matmul_bias_kernel(x_ref, w_ref, b_ref, o_ref, *, compute_dtype):
    k = pl.program_id(2)

    @pl.when(k == 0)
    def _():
        # Bias doubles as the accumulator init (adds it exactly once).
        o_ref[...] = jnp.broadcast_to(b_ref[...].astype(o_ref.dtype), o_ref.shape)

    o_ref[...] += jnp.dot(
        x_ref[...].astype(compute_dtype),
        w_ref[...].astype(compute_dtype),
        preferred_element_type=jnp.float32,
    ).astype(o_ref.dtype)


def linear_pallas(x, w_t, bias, *, tm=None, tn=None, tk=None,
                  compute_dtype=jnp.float32):
    """y = x @ w_t + bias.  x:(M,K), w_t:(K,N), bias:(N,) -> (M,N) float32."""
    M, K = x.shape
    K2, N = w_t.shape
    assert K == K2 and bias.shape == (N,)

    tm = tm if tm is not None else _pick_tile(M, 8, 512)
    tn = tn if tn is not None else _pick_tile(N, 128, 512)
    if tk is None:
        # Small contraction axis: use the true K (full-extent block is legal),
        # avoiding K-padding to 128 (8x extra HBM reads + zero MXU passes).
        tk = K if K <= 512 else _pick_tile(K, 128, 512)
    Mp, Np, Kp = _round_up(M, tm), _round_up(N, tn), _round_up(K, tk)

    xp = x.astype(jnp.float32)
    wp = w_t.astype(jnp.float32)
    bp = bias.astype(jnp.float32).reshape(1, N)
    if (Mp, Kp) != (M, K):
        xp = jnp.pad(xp, ((0, Mp - M), (0, Kp - K)))
    if (Kp, Np) != (K, N):
        wp = jnp.pad(wp, ((0, Kp - K), (0, Np - N)))
    if Np != N:
        bp = jnp.pad(bp, ((0, 0), (0, Np - N)))

    # Explicit scoped-VMEM limit sized from the actual (double-buffered) blocks.
    vmem_need = 4 * (2 * (tm * tk + tk * tn + tn) + 2 * tm * tn)
    vmem_limit = int(min(max(2 * vmem_need, 32 << 20), 100 << 20))

    grid = (Mp // tm, Np // tn, Kp // tk)
    kernel = functools.partial(_matmul_bias_kernel, compute_dtype=compute_dtype)
    out = pl.pallas_call(
        kernel,
        out_shape=jax.ShapeDtypeStruct((Mp, Np), jnp.float32),
        grid_spec=pltpu.PrefetchScalarGridSpec(
            num_scalar_prefetch=0,
            grid=grid,
            in_specs=[
                pl.BlockSpec((tm, tk), lambda i, j, k: (i, k)),
                pl.BlockSpec((tk, tn), lambda i, j, k: (k, j)),
                pl.BlockSpec((1, tn), lambda i, j, k: (0, j)),
            ],
            out_specs=pl.BlockSpec((tm, tn), lambda i, j, k: (i, j)),
        ),
        compiler_params=pltpu.CompilerParams(
            dimension_semantics=("parallel", "parallel", "arbitrary"),
            vmem_limit_bytes=vmem_limit,
        ),
    )(xp, wp, bp)
    if (Mp, Np) != (M, N):
        out = out[:M, :N]
    return out


# ---------------------------------------------------------------------------
# Kernel 2: sequential EI-RNN recurrence, time-chunked + batch-tiled.
#   grid = (batch_tiles, time_chunks); time axis is "arbitrary" (sequential),
#   batch axis is "parallel". The final-state output block (constant index over
#   the time axis) is the VMEM-resident carry; h = relu(state) is re-derived.
# ---------------------------------------------------------------------------
def _eirnn_recurrence_kernel(xproj_ref, whh_ref, out_ref, state_ref,
                             *, alpha, oneminusalpha, tc, compute_dtype):
    c = pl.program_id(1)            # time-chunk index (sequential)

    @pl.when(c == 0)
    def _():                         # init_hidden -> zeros (per batch tile)
        state_ref[...] = jnp.zeros_like(state_ref)

    def step(i, carry):
        state, h = carry
        rec = jnp.dot(h.astype(compute_dtype), whh_ref[...],
                      preferred_element_type=jnp.float32)
        total = xproj_ref[i] + rec   # bias (b_ih + b_hh) already folded into xproj
        state = state * oneminusalpha + total * alpha
        # TODO(synk): recurrent Gaussian noise (self._sigma_rec * randn_like)
        # is omitted; exact for the module default sigma_rec=0.
        h = jnp.maximum(state, 0.0)
        out_ref[i] = h.astype(out_ref.dtype)
        return state, h

    state0 = state_ref[...]
    state, _ = lax.fori_loop(0, tc, step,
                             (state0, jnp.maximum(state0, 0.0)), unroll=True)
    state_ref[...] = state


# ---------------------------------------------------------------------------
# EIRNN forward (wrapper)
# ---------------------------------------------------------------------------
def eirnn_forward(x, params, *, alpha, mode='dense', noneg=True,
                  with_tanh=False, mxu_dtype=jnp.float32):
    """x: (seq_len, batch, input_size) f32 -> (outputs, (state, output))."""
    T, B, I = x.shape
    H = params['w_hh'].shape[0]

    # ---- effective weights, hoisted out of the kernels ----------------------
    w_ih = params['w_ih']
    if noneg and mode != 'none':
        # PosWLinear: abs(W); with_Tanh overwrites the output with the relu(W)
        # branch in the PyTorch forward, so only relu survives in that case.
        w_ih_eff = jnp.maximum(w_ih, 0.0) if with_tanh else jnp.abs(w_ih)
    else:
        w_ih_eff = w_ih
    if mode == 'none':
        w_hh_eff = params['w_hh']
    else:
        w_hh_eff = jnp.abs(params['w_hh']) * params['dale_mask'] * params['block_mask']

    Bp = _round_up(B, 8)
    Hp = _round_up(H, 128)

    # Pre-transpose + pad to Hp columns so the projection output is ALREADY in
    # the recurrence layout (no slice / re-pad passes over the activation).
    w_ih_t = jnp.pad(w_ih_eff.T.astype(jnp.float32), ((0, 0), (0, Hp - H)))   # (I, Hp)
    # Fold b_hh into the projection bias (mathematically identical): removes a
    # per-timestep broadcast add and one DMA'd input from the sequential loop.
    b_comb = jnp.pad((params['b_ih'] + params['b_hh']).astype(jnp.float32),
                     (0, Hp - H))
    w_hh_t = jnp.pad(w_hh_eff.T.astype(jnp.float32),
                     ((0, Hp - H), (0, Hp - H))).astype(mxu_dtype)            # (Hp, Hp)

    x_pad = jnp.pad(x.astype(jnp.float32), ((0, 0), (0, Bp - B), (0, 0)))

    # 1) input2h for ALL timesteps: one tiled pipelined matmul + bias whose
    #    output reshapes directly to (T, Bp, Hp).
    x_proj = linear_pallas(x_pad.reshape(T * Bp, I), w_ih_t, b_comb,
                           compute_dtype=mxu_dtype)
    x_proj = x_proj.reshape(T, Bp, Hp)

    # 2) sequential recurrence: time-chunked, batch-tiled when Bp >= 16.
    tb = Bp // 2 if (Bp >= 16 and Bp % 16 == 0) else Bp
    nb = Bp // tb
    tc_cap = min(16, max(1, (4 << 20) // (tb * Hp * 4)))
    Tc = _largest_divisor_leq(T, tc_cap)
    nc = T // Tc

    whh_bytes = Hp * Hp * jnp.dtype(mxu_dtype).itemsize
    if whh_bytes >= (8 << 20):
        # Constant-index resident weight: avoid pointless double-buffering of a
        # multi-MiB block (critical on v7x's 64 MiB VMEM / v5e's default limit).
        whh_spec = pl.BlockSpec((Hp, Hp), lambda b, c: (0, 0),
                                pipeline_mode=pl.Buffered(1))
        whh_bufs = 1
    else:
        whh_spec = pl.BlockSpec((Hp, Hp), lambda b, c: (0, 0))
        whh_bufs = 2

    vmem_need = (whh_bytes * whh_bufs
                 + 2 * 2 * (Tc * tb * Hp * 4)     # x_proj in + outputs out (2-buf)
                 + 2 * (tb * Hp * 4))             # resident state block
    vmem_limit = int(min(max(vmem_need + (8 << 20), 32 << 20), 100 << 20))

    kernel = functools.partial(_eirnn_recurrence_kernel,
                               alpha=float(alpha),
                               oneminusalpha=1.0 - float(alpha),
                               tc=Tc,
                               compute_dtype=mxu_dtype)

    outputs_p, state_p = pl.pallas_call(
        kernel,
        out_shape=(
            jax.ShapeDtypeStruct((T, Bp, Hp), jnp.float32),
            jax.ShapeDtypeStruct((Bp, Hp), jnp.float32),
        ),
        grid_spec=pltpu.PrefetchScalarGridSpec(
            num_scalar_prefetch=0,
            grid=(nb, nc),
            in_specs=(
                pl.BlockSpec((Tc, tb, Hp), lambda b, c: (c, b, 0)),   # x_proj chunk
                whh_spec,                                             # W_hh^T resident
            ),
            out_specs=(
                pl.BlockSpec((Tc, tb, Hp), lambda b, c: (c, b, 0)),   # outputs chunk
                pl.BlockSpec((tb, Hp), lambda b, c: (b, 0)),          # state carry
            ),
        ),
        compiler_params=pltpu.CompilerParams(
            dimension_semantics=("parallel", "arbitrary"),
            vmem_limit_bytes=vmem_limit,
        ),
    )(x_proj, w_hh_t)

    outputs = outputs_p[:, :B, :H]
    state = state_p[:B, :H]
    return outputs, (state, outputs[-1])


# ---------------------------------------------------------------------------
# Parameter init (matches the PyTorch reset_parameters ranges / masks)
# ---------------------------------------------------------------------------
def init_eirnn_params(key, input_size, hidden_size, e_prop, mode='dense',
                      block_groups=2):
    e_size = int(e_prop * hidden_size)
    i_size = hidden_size - e_size
    k1, k2, k3, k4 = jax.random.split(key, 4)

    bound_ih = 1.0 / math.sqrt(input_size)
    w_ih = jax.random.uniform(k1, (hidden_size, input_size), jnp.float32,
                              -bound_ih, bound_ih)
    b_ih = jax.random.uniform(k2, (hidden_size,), jnp.float32,
                              -bound_ih, bound_ih)

    bound_hh = 1.0 / math.sqrt(hidden_size)
    w_hh = jax.random.uniform(k3, (hidden_size, hidden_size), jnp.float32,
                              -bound_hh, bound_hh)
    if mode in ('dense', 'block'):
        # weight[:, :e_size] /= e_size / i_size
        w_hh = w_hh.at[:, :e_size].multiply(i_size / e_size)
    b_hh = jax.random.uniform(k4, (hidden_size,), jnp.float32,
                              -bound_hh, bound_hh)

    if mode in ('dense', 'block'):
        dale = np.tile([1.0] * e_size + [-1.0] * i_size, (hidden_size, 1))
    else:
        dale = np.ones((hidden_size, hidden_size))
    np.fill_diagonal(dale, 0.0)

    block_mask = np.ones((hidden_size, hidden_size), np.float32)
    if mode == 'block':
        group_size = e_size // block_groups
        for g in range(block_groups):
            start = g * group_size
            end = (g + 1) * group_size if g < block_groups - 1 else e_size
            block_mask[start:end, :start] = 0
            block_mask[start:end, end:e_size] = 0
        block_mask[:, e_size:] = 1
        block_mask[e_size:, :] = 1

    return dict(
        w_ih=w_ih, b_ih=b_ih, w_hh=w_hh, b_hh=b_hh,
        dale_mask=jnp.asarray(dale, jnp.float32),
        block_mask=jnp.asarray(block_mask, jnp.float32),
    )


# ---------------------------------------------------------------------------
# Pure-JAX reference (mirrors the PyTorch forward with sigma_rec = 0)
# ---------------------------------------------------------------------------
def eirnn_reference(x, params, *, alpha, mode='dense', noneg=True,
                    with_tanh=False):
    w_ih = params['w_ih']
    if noneg and mode != 'none':
        w_ih_eff = jnp.maximum(w_ih, 0.0) if with_tanh else jnp.abs(w_ih)
    else:
        w_ih_eff = w_ih
    if mode == 'none':
        w_hh_eff = params['w_hh']
    else:
        w_hh_eff = jnp.abs(params['w_hh']) * params['dale_mask'] * params['block_mask']

    T, B, _ = x.shape
    H = w_hh_eff.shape[0]
    state = jnp.zeros((B, H), jnp.float32)
    h = jnp.zeros((B, H), jnp.float32)
    outs = []
    for t in range(T):
        total = (x[t] @ w_ih_eff.T + params['b_ih']
                 + h @ w_hh_eff.T + params['b_hh'])
        state = state * (1.0 - alpha) + total * alpha
        h = jnp.maximum(state, 0.0)
        outs.append(h)
    return jnp.stack(outs, 0), (state, h)


if __name__ == "__main__":
    key = jax.random.PRNGKey(0)

    seq_len, batch, input_size, hidden_size = 8, 2, 16, 32
    e_prop = 0.8
    mode = 'dense'          # input2h = PosWLinear (abs weight), h2h = EIRecLinear(dense)
    dt, tau = 20.0, 100.0
    alpha = dt / tau

    params = init_eirnn_params(key, input_size, hidden_size, e_prop, mode=mode)
    kx = jax.random.fold_in(key, 123)
    x = jax.random.normal(kx, (seq_len, batch, input_size), dtype=jnp.float32)

    out, (state, h_last) = eirnn_forward(x, params, alpha=alpha, mode=mode,
                                         noneg=True, with_tanh=False)
    out = jax.block_until_ready(out)
    state = jax.block_until_ready(state)
    h_last = jax.block_until_ready(h_last)

    out_ref, (state_ref, h_ref) = eirnn_reference(x, params, alpha=alpha,
                                                  mode=mode, noneg=True,
                                                  with_tanh=False)
    assert jnp.allclose(out, out_ref, atol=1e-4, rtol=1e-4), "outputs mismatch"
    assert jnp.allclose(state, state_ref, atol=1e-4, rtol=1e-4), "state mismatch"
    assert jnp.allclose(h_last, h_ref, atol=1e-4, rtol=1e-4), "hidden mismatch"

    print("KERNEL_OK")
</pallas_src>

<mosaic_0001>
module attributes {stable_mosaic.version = 11 : i64} {
  func.func @_matmul_bias_kernel(%arg0: i32, %arg1: i32, %arg2: i32, %arg3: memref<64x16xf32, #tpu.memory_space<vmem>>, %arg4: memref<16x128xf32, #tpu.memory_space<vmem>>, %arg5: memref<1x128xf32, #tpu.memory_space<vmem>>, %arg6: memref<64x128xf32, #tpu.memory_space<vmem>>) attributes {dimension_semantics = [#tpu.dimension_semantics<parallel>, #tpu.dimension_semantics<parallel>, #tpu.dimension_semantics<arbitrary>], iteration_bounds = array<i64: 1, 1, 1>, scalar_prefetch = 0 : i64, scratch_operands = 0 : i64, tpu.core_type = #tpu.core_type<tc>, window_params = [{transform_indices = @transform_0, window_bounds = array<i64: 64, 16>}, {transform_indices = @transform_1, window_bounds = array<i64: 16, 128>}, {transform_indices = @transform_2, window_bounds = array<i64: 1, 128>}, {transform_indices = @transform_3, window_bounds = array<i64: 64, 128>}]} {
    %c0_i32 = arith.constant 0 : i32
    %0 = arith.cmpi eq, %arg2, %c0_i32 : i32
    %1 = arith.extui %0 : i1 to i32
    %c0_i32_0 = arith.constant 0 : i32
    %2 = arith.cmpi ne, %1, %c0_i32_0 : i32
    scf.if %2 {
      %c0_8 = arith.constant 0 : index
      %c0_9 = arith.constant 0 : index
      %9 = vector.load %arg5[%c0_8, %c0_9] : memref<1x128xf32, #tpu.memory_space<vmem>>, vector<1x128xf32>
      %10 = vector.shape_cast %9 : vector<1x128xf32> to vector<1x128xf32>
      %11 = vector.broadcast %10 : vector<1x128xf32> to vector<64x128xf32>
      %c0_10 = arith.constant 0 : index
      %c0_11 = arith.constant 0 : index
      %12 = vector.load %arg6[%c0_10, %c0_11] : memref<64x128xf32, #tpu.memory_space<vmem>>, vector<64x128xf32>
      tpu.vector_store %arg6[%c0_10, %c0_11], %11 {strides = array<i32>} : memref<64x128xf32, #tpu.memory_space<vmem>>, vector<64x128xf32>,
    } else {
    }
    %c0 = arith.constant 0 : index
    %c0_1 = arith.constant 0 : index
    %3 = vector.load %arg6[%c0, %c0_1] : memref<64x128xf32, #tpu.memory_space<vmem>>, vector<64x128xf32>
    %c0_2 = arith.constant 0 : index
    %c0_3 = arith.constant 0 : index
    %4 = vector.load %arg3[%c0_2, %c0_3] : memref<64x16xf32, #tpu.memory_space<vmem>>, vector<64x16xf32>
    %c0_4 = arith.constant 0 : index
    %c0_5 = arith.constant 0 : index
    %5 = vector.load %arg4[%c0_4, %c0_5] : memref<16x128xf32, #tpu.memory_space<vmem>>, vector<16x128xf32>
    %cst = arith.constant dense<0.000000e+00> : vector<64x128xf32>
    %6 = tpu.matmul %4, %5, %cst {dimension_numbers = #tpu.dot_dimension_numbers<[1], [0], [0], [1], [0, 0, 1, 1], [], []>} : vector<64x16xf32>, vector<16x128xf32>, vector<64x128xf32> -> vector<64x128xf32>
    %7 = arith.addf %3, %6 : vector<64x128xf32>
    %c0_6 = arith.constant 0 : index
    %c0_7 = arith.constant 0 : index
    %8 = vector.load %arg6[%c0_6, %c0_7] : memref<64x128xf32, #tpu.memory_space<vmem>>, vector<64x128xf32>
    tpu.vector_store %arg6[%c0_6, %c0_7], %7 {strides = array<i32>} : memref<64x128xf32, #tpu.memory_space<vmem>>, vector<64x128xf32>,
    return
  }
  func.func @transform_0(%arg0: i32, %arg1: i32, %arg2: i32) -> (i32, i32) {
    %c0_i32 = arith.constant 0 : i32
    return %arg0, %arg2 : i32, i32
  }
  func.func @transform_1(%arg0: i32, %arg1: i32, %arg2: i32) -> (i32, i32) {
    %c0_i32 = arith.constant 0 : i32
    return %arg2, %arg1 : i32, i32
  }
  func.func @transform_2(%arg0: i32, %arg1: i32, %arg2: i32) -> (i32, i32) {
    %c0_i32 = arith.constant 0 : i32
    %c0_i32_0 = arith.constant 0 : i32
    return %c0_i32, %arg1 : i32, i32
  }
  func.func @transform_3(%arg0: i32, %arg1: i32, %arg2: i32) -> (i32, i32) {
    %c0_i32 = arith.constant 0 : i32
    return %arg0, %arg1 : i32, i32
  }
}

</mosaic_0001>

<bundles_post_ra>
// kernel: tpu_custom_call.1
= control target key start
LH: loop header
LB: loop body
LE: loop exit
PB: predicated region body
PF: predicated region fallthrough
CT: control target
= control target key end

     0   :  { %vm52_vm0 = vcmask 130048   ;;  %s358_s0 = inlined_call_operand.vmem [shape: f32[64,16], index: 0, kind: input, shape index: {}]   ;;  %s359_s1 = inlined_call_operand.vmem [shape: f32[16,128], index: 1, kind: input, shape index: {}]   ;;  %s360_s2 = inlined_call_operand.vmem [shape: f32[1,128], index: 2, kind: input, shape index: {}]   ;;  %s361_s3 = inlined_call_operand.hbm [shape: f32[64,128], index: 3, kind: output, shape index: {}]  }
   0x1   :  { %v50_v0 = vld [vmem:[%s359_s1] sm:$0xff]  ;;  %v51_v1 = vld [vmem:[%s359_s1 + $0x8] sm:$0xff] }
   0x2   :  { %v42_v2 = vld [vmem:[%s358_s0] sm:$0xff]  ;;  %v249_v3 = vpack.c.bf16 %v51_v1, %v50_v0 }
   0x3   :  { %237 = vmatprep.mubr.msk.f32.mxu0 %vm52_vm0, %v42_v2  ;;  %v46_v4 = vld [vmem:[%s358_s0 + $0x20] sm:$0xff] }
   0x4   :  { %243 = vmatprep.mubr.msk.f32.mxu1 %vm52_vm0, %v46_v4  ;;  %250 = vmatprep.subr.bf16.mxu0 %v249_v3 }
   0x5   :  { %253 = vmatprep.subr.bf16.mxu1 %v249_v3 }
   0x6   :  { %8 = vsyncpa [#allocation3], 0  ;;  %252 = vmatpush3.bf16.msra.mxu0 %v249_v3  ;;  %254 = vmatpush3.bf16.msra.mxu1 %v249_v3  ;;  %v43_v5 = vld [vmem:[%s358_s0 + $0x8] sm:$0xff]  ;;  %v44_v7 = vld [vmem:[%s358_s0 + $0x10] sm:$0xff]  ;;  %s282_s6 = smov [#allocation2]  }
   0x7   :  { %v47_v6 = vld [vmem:[%s358_s0 + $0x28] sm:$0xff]  ;;  %v48_v8 = vld [vmem:[%s358_s0 + $0x30] sm:$0xff]  ;;  %v45_v9 = vld [vmem:[%s358_s0 + $0x18] sm:$0xff]  ;;  %s203_s7 = sshll.u32 %s282_s6, 4  ;;  %s204_s7 = int_to_ptr.vmem [resolvable:$true] %s203_s7 }
   0x8   :  { %v49_v10 = vld [vmem:[%s358_s0 + $0x38] sm:$0xff]  ;;  %v214_v11 = vld [vmem:[%s360_s2] ss:$0 sm:$0xff]  ;;  %s258_s0 = scalar_lea.vmem %s204_s7, 1024  ;;  %p263_p1 = scmp.lt.s32.totalorder %s204_s7, %s204_s7 }
   0x9   :  { %238 = vmatmul.mubr.msk.f32.vlgmr.msra.gmra.mrb[0].mxu0 %vm52_vm0, %v43_v5  ;;  %244 = vmatmul.mubr.msk.f32.vlgmr.msra.gmra.mrb[0].mxu1 %vm52_vm0, %v47_v6  ;;  %p259_p0 = scmp.ne.s32.totalorder %s204_s7, %s258_s0  ;;  %p264_p2 = scmp.lt.s32.totalorder %s258_s0, %s258_s0 }
   0xa   :  { %240 = vmatprep.mubr.msk.f32.mxu0 %vm52_vm0, %v44_v7  ;;  %246 = vmatprep.mubr.msk.f32.mxu1 %vm52_vm0, %v48_v8 }
   0xb   :  { %p265_p3 = por %p264_p2, %p263_p1 }
   0xd   :  { %241 = vmatmul.mubr.msk.f32.gmra.mrb[2].mxu0 %vm52_vm0, %v45_v9  ;;  %247 = vmatmul.mubr.msk.f32.gmra.mrb[2].mxu1 %vm52_vm0, %v49_v10  ;;  %p266_p4 = pnand %p265_p3, %p259_p0 }
  0xdc   :  { %v239_v12 = vpop.f32.mrb[0].mxu0  ;;  %v245_v13 = vpop.f32.mrb[0].mxu1 }
  0xdd   :  { %v183_v14 = vadd.f32 %v239_v12, %v214_v11  ;;  %v187_v15 = vadd.f32 %v245_v13, %v214_v11  ;;  %v143_v16 = vpop.f32.mrb[1].mxu0  ;;  %v163_v17 = vpop.f32.mrb[1].mxu1 }
  0xde   :  { %v182_v18 = vadd.f32 %v214_v11, %v143_v16  ;;  %v186_v19 = vadd.f32 %v214_v11, %v163_v17 }
  0xdf   :  { %191 = vst [vmem:[#allocation2 + $0x8] sm:$0xff] %v183_v14  ;;  %195 = vst [vmem:[#allocation2 + $0x28] sm:$0xff] %v187_v15 }
  0xe0   :  { %190 = vst [vmem:[#allocation2] sm:$0xff] %v182_v18  ;;  %194 = vst [vmem:[#allocation2 + $0x20] sm:$0xff] %v186_v19  ;;  %v242_v20 = vpop.f32.mrb[2].mxu0  ;;  %v248_v21 = vpop.f32.mrb[2].mxu1 }
  0xe1   :  { %v185_v22 = vadd.f32 %v242_v20, %v214_v11  ;;  %v189_v23 = vadd.f32 %v248_v21, %v214_v11  ;;  %v153_v24 = vpop.f32.mrb[3].mxu0  ;;  %v173_v25 = vpop.f32.mrb[3].mxu1 }
  0xe2   :  { %v184_v26 = vadd.f32 %v214_v11, %v153_v24  ;;  %v188_v27 = vadd.f32 %v214_v11, %v173_v25 }
  0xe3   :  { %193 = vst [vmem:[#allocation2 + $0x18] sm:$0xff] %v185_v22  ;;  %197 = vst [vmem:[#allocation2 + $0x38] sm:$0xff] %v189_v23 }
  0xe4   :  { %192 = vst [vmem:[#allocation2 + $0x10] sm:$0xff] %v184_v26  ;;  %196 = vst [vmem:[#allocation2 + $0x30] sm:$0xff] %v188_v27 }
  0xe5   :  { %269 = shalt.err (!%p266_p4)
}
  0xe6   :  { %s270_s9 = scalar_lea.hbm %s361_s3, 1024 }
  0xe7   :  { %p271_p5 = scmp.ne.s32.totalorder %s361_s3, %s270_s9  ;;  %p274_p6 = scmp.lt.u32.totalorder %s270_s9, %s361_s3 }
  0xe9   :  { %p276_p7 = pnand %p274_p6, %p271_p5 }
  0xeb   :  { %279 = shalt.err (!%p276_p7)
}
  0xec   :  { %s283_s14 = smov 128   ;;  %s284_s15 = smov 8  }
  0xed   :  { %209 = dma.vmem_to_hbm [thread:$0]  %s204_s7, 1024, %s361_s3, [#allocation3], %s283_s14, %s283_s14, %s284_s15  }
  0xee   :  { %280 = dma.done.wait [#allocation3], 1024  }
  0xef   :  { %281 = vsyncadd [#allocation3], 4294966272 }
  0xf0   :  { %213 = vsyncpa [#allocation3], 1 }

</bundles_post_ra>
